<compile_context>
chip_gen: v7x
topology: tpu7x:2x2x1
jax: 0.10.0
libtpu: 0.0.40
codegen_flags: <defaults>
</compile_context>

<pallas_src>
import functools

import jax
import jax.numpy as jnp
from jax.experimental import pallas as pl
from jax.experimental.pallas import tpu as pltpu


def _leaky(x, slope=0.01):
    return jnp.where(x > 0, x, slope * x)


# --------------------------------------------------------------------------
# Kernel: one batch tile, all weights VMEM-resident.
# --------------------------------------------------------------------------
def wae_kernel(x_ref, scale_ref,
               w_e0_ref, b_e0_ref, w_er_ref, b_er_ref,
               w_f_ref, b_f_ref, w_b_ref, b_b_ref,
               w_d0_ref, b_d0_ref, w_dm_ref, b_dm_ref, w_dl_ref, b_dl_ref,
               out_ref):
    L = scale_ref.shape[0]          # encoder_layers
    mxu_dt = w_e0_ref.dtype

    # ---- encoder stack: one block-diagonal matmul per layer (lane-packed) ----
    x = x_ref[...].astype(mxu_dt)                               # (Bt, F*D)
    h = jnp.dot(x, w_e0_ref[...],
                preferred_element_type=jnp.float32) + b_e0_ref[...]
    h = h * scale_ref[0:1, :]                                   # (Bt, F*H), f32
    for l in range(1, L):
        w = w_er_ref[l - 1]                                     # (F*H, F*H)
        h = jnp.dot(h.astype(mxu_dt), w,
                    preferred_element_type=jnp.float32) + b_er_ref[l - 1]
        h = h * scale_ref[l:l + 1, :]

    # ---- fusion: cat(outs) @ Wf as one matmul ----
    fused = jnp.dot(h.astype(mxu_dt), w_f_ref[...],
                    preferred_element_type=jnp.float32) + b_f_ref[...]
    fused = _leaky(fused)

    # ---- bottleneck ----
    bott = jnp.dot(fused.astype(mxu_dt), w_b_ref[...],
                   preferred_element_type=jnp.float32) + b_b_ref[...]
    bott = _leaky(bott)

    # ---- decoder: [Linear, LeakyReLU] x L then final (lane-padded) Linear ----
    h = _leaky(jnp.dot(bott.astype(mxu_dt), w_d0_ref[...],
                       preferred_element_type=jnp.float32) + b_d0_ref[...])
    for j in range(L - 1):
        h = _leaky(jnp.dot(h.astype(mxu_dt), w_dm_ref[j],
                           preferred_element_type=jnp.float32) + b_dm_ref[j])
    recon = jnp.dot(h.astype(mxu_dt), w_dl_ref[...],
                    preferred_element_type=jnp.float32) + b_dl_ref[...]
    out_ref[...] = recon.astype(out_ref.dtype)                  # (Bt, 128) lane-dense


# --------------------------------------------------------------------------
# Wrapper: layout plumbing (packing, block-diagonal weights, attention table)
# is done in XLA; the pallas_call is batch-tiled.
# --------------------------------------------------------------------------
def wavelet_autoencoder(x_stacked, params, *, block_b=256,
                        mxu_dtype=jnp.float32):
    F, B, D = x_stacked.shape
    L, F_att, H = params["att"].shape
    assert F_att == F
    assert L <= F, "reference indexing softmax(att)[l, i] requires L <= freq_num"
    assert F <= H, "reference indexing softmax(att)[l, i] requires freq_num <= hidden"
    fusion = params["w_f"].shape[-1]
    bott_dim = params["w_b"].shape[-1]
    D_pad = 128 * pl.cdiv(D, 128)        # lane-dense output width
    f32 = jnp.float32

    # ---- lane-pack the frequency channels of x: (F, B, D) -> (B, F*D) ----
    x_packed = jnp.transpose(x_stacked, (1, 0, 2)).reshape(B, F * D).astype(mxu_dtype)

    # ---- attention: only the scalars softmax(att[l], axis=0)[l, i] are used ----
    norm = jax.nn.softmax(params["att"], axis=1)                 # (L, F, H)
    lidx = jnp.arange(L)
    scal = norm[lidx, lidx][:, :F]                               # (L, F): norm[l, l, i]
    scale = jnp.repeat(scal, H, axis=1).astype(f32)              # (L, F*H)

    # ---- block-diagonal encoder weights (lane-packed layout) ----
    def block_diag(ws):                    # (F, din, dout) -> (F*din, F*dout)
        f, din, dout = ws.shape
        eye = jnp.eye(f, dtype=ws.dtype)
        return jnp.einsum("ij,iab->iajb", eye, ws).reshape(f * din, f * dout)

    w_e0 = block_diag(params["w_e0"]).astype(mxu_dtype)          # (F*D, F*H)
    b_e0 = params["b_e0"].reshape(1, F * H).astype(f32)
    if L > 1:
        w_er = jnp.stack([block_diag(params["w_er"][l])
                          for l in range(L - 1)]).astype(mxu_dtype)  # (L-1, F*H, F*H)
        b_er = params["b_er"].reshape(L - 1, 1, F * H).astype(f32)
        w_dm = params["w_dm"].astype(mxu_dtype)                  # (L-1, H, H)
        b_dm = params["b_dm"].astype(f32)                        # (L-1, 1, H)
    else:                                                        # unused dummies
        w_er = jnp.zeros((1, F * H, F * H), mxu_dtype)
        b_er = jnp.zeros((1, 1, F * H), f32)
        w_dm = jnp.zeros((1, H, H), mxu_dtype)
        b_dm = jnp.zeros((1, 1, H), f32)

    w_f = params["w_f"].reshape(F * H, fusion).astype(mxu_dtype)
    b_f = params["b_f"].astype(f32)
    w_b = params["w_b"].astype(mxu_dtype)
    b_b = params["b_b"].astype(f32)
    w_d0 = params["w_d0"].astype(mxu_dtype)
    b_d0 = params["b_d0"].astype(f32)
    # final decoder layer padded to 128 output lanes (lane-dense store)
    w_dl = jnp.zeros((H, D_pad), mxu_dtype).at[:, :D].set(
        params["w_dl"].astype(mxu_dtype))
    b_dl = jnp.zeros((1, D_pad), f32).at[:, :D].set(params["b_dl"].astype(f32))

    args = (x_packed, scale, w_e0, b_e0, w_er, b_er,
            w_f, b_f, w_b, b_b, w_d0, b_d0, w_dm, b_dm, w_dl, b_dl)

    # ---- batch tiling ----
    bt = B if B <= block_b else block_b
    assert bt == B or bt % 8 == 0, "batch tile must be a multiple of 8"
    grid = (pl.cdiv(B, bt),)

    def _full_spec(a):
        idx = (0,) * a.ndim
        return pl.BlockSpec(a.shape, lambda b, _idx=idx: _idx)

    in_specs = [pl.BlockSpec((bt, F * D), lambda b: (b, 0))]
    in_specs += [_full_spec(a) for a in args[1:]]
    out_spec = pl.BlockSpec((bt, D_pad), lambda b: (b, 0))

    # ---- VMEM budget + advisory cost estimate ----
    def _nbytes(a):
        return int(a.size) * jnp.dtype(a.dtype).itemsize

    param_bytes = sum(_nbytes(a) for a in args[1:])
    tile_bytes = 2 * (bt * F * D * jnp.dtype(mxu_dtype).itemsize + bt * D_pad * 4)
    vmem_limit = int(min(max(2 * param_bytes + tile_bytes + (8 << 20), 16 << 20),
                         48 << 20))           # fits v7x (64 MiB) as well

    flops = 2 * B * (F * D * F * H
                     + (L - 1) * (F * H) ** 2
                     + F * H * fusion
                     + fusion * bott_dim
                     + bott_dim * H
                     + (L - 1) * H * H
                     + H * D_pad)
    bytes_accessed = _nbytes(x_packed) + param_bytes + B * D_pad * 4
    cost = pl.CostEstimate(flops=flops, transcendentals=0,
                           bytes_accessed=bytes_accessed)

    out_padded = pl.pallas_call(
        wae_kernel,
        out_shape=jax.ShapeDtypeStruct((B, D_pad), f32),
        grid=grid,
        in_specs=in_specs,
        out_specs=out_spec,
        compiler_params=pltpu.CompilerParams(
            dimension_semantics=("parallel",),
            vmem_limit_bytes=vmem_limit),
        cost_estimate=cost,
    )(*args)
    return out_padded[:, :D]


# --------------------------------------------------------------------------
# Parameter init (weights stored transposed w.r.t. PyTorch: (in, out)).
# --------------------------------------------------------------------------
def init_params(key, input_dim, encoder_layers, hidden, fusion_dim,
                bottleneck_dim, freq_num):
    ks = iter(jax.random.split(key, 32))
    n = lambda shape: jax.random.normal(next(ks), shape, jnp.float32) * 0.1
    return dict(
        att=n((encoder_layers, freq_num, hidden)),
        w_e0=n((freq_num, input_dim, hidden)),
        b_e0=n((freq_num, 1, hidden)),
        w_er=n((encoder_layers - 1, freq_num, hidden, hidden)),
        b_er=n((encoder_layers - 1, freq_num, 1, hidden)),
        w_f=n((freq_num, hidden, fusion_dim)),
        b_f=n((1, fusion_dim)),
        w_b=n((fusion_dim, bottleneck_dim)),
        b_b=n((1, bottleneck_dim)),
        w_d0=n((bottleneck_dim, hidden)),
        b_d0=n((1, hidden)),
        w_dm=n((encoder_layers - 1, hidden, hidden)),
        b_dm=n((encoder_layers - 1, 1, hidden)),
        w_dl=n((hidden, input_dim)),
        b_dl=n((1, input_dim)),
    )


def reference_forward(x_stacked, params):
    """Pure-JAX mirror of the PyTorch forward (for validation)."""
    L, F, H = params["att"].shape
    prev = [x_stacked[i] for i in range(F)]
    for l in range(L):
        enc = []
        for i in range(F):
            if l == 0:
                w, b = params["w_e0"][i], params["b_e0"][i]
            else:
                w, b = params["w_er"][l - 1, i], params["b_er"][l - 1, i]
            enc.append(prev[i] @ w + b)
        norm = jax.nn.softmax(params["att"][l], axis=0)     # (F, H)
        # PyTorch quirk: normalized_att_vectors[l][i] -> scalar norm[l, i]
        prev = [norm[l, i] * enc[i] for i in range(F)]
    cat = jnp.concatenate(prev, axis=1)
    wf_full = params["w_f"].reshape(F * H, -1)
    fused = _leaky(cat @ wf_full + params["b_f"][0])
    bott = _leaky(fused @ params["w_b"] + params["b_b"][0])
    h = _leaky(bott @ params["w_d0"] + params["b_d0"][0])
    for j in range(L - 1):
        h = _leaky(h @ params["w_dm"][j] + params["b_dm"][j][0])
    return h @ params["w_dl"] + params["b_dl"][0]


if __name__ == "__main__":
    # Small shapes consistent with the module's forward.
    batch = 64
    input_dim = 16
    encoder_layers = 3
    encoder_hidden_dim = 32
    fusion_dim = 32
    bottleneck_dim = 16
    freq_num = 3

    key = jax.random.PRNGKey(0)
    k_x, k_p = jax.random.split(key)
    # freq_X_list stacked: (freq_num, batch, input_dim)
    x_stacked = jax.random.normal(k_x, (freq_num, batch, input_dim), jnp.float32)
    params = init_params(k_p, input_dim, encoder_layers, encoder_hidden_dim,
                         fusion_dim, bottleneck_dim, freq_num)

    ref = reference_forward(x_stacked, params)

    # f32 MXU path (strict check); block_b=32 -> 2-step batch grid.
    out = wavelet_autoencoder(x_stacked, params, block_b=32)
    out = jax.block_until_ready(out)
    assert out.shape == (batch, input_dim)
    assert jnp.allclose(out, ref, atol=1e-5, rtol=1e-5), (
        f"f32 max abs err = {jnp.max(jnp.abs(out - ref))}")

    # bf16 MXU operands (v6e/v7x fast path), f32 accumulation / elementwise.
    out_bf16 = wavelet_autoencoder(x_stacked, params, block_b=32,
                                   mxu_dtype=jnp.bfloat16)
    out_bf16 = jax.block_until_ready(out_bf16)
    assert jnp.allclose(out_bf16, ref, atol=5e-2, rtol=1e-1), (
        f"bf16 max abs err = {jnp.max(jnp.abs(out_bf16 - ref))}")

    print("KERNEL_OK")
</pallas_src>

<mosaic_0001>
module attributes {stable_mosaic.version = 11 : i64} {
  func.func @wae_kernel(%arg0: i32, %arg1: memref<32x48xf32, #tpu.memory_space<vmem>>, %arg2: memref<3x96xf32, #tpu.memory_space<vmem>>, %arg3: memref<48x96xf32, #tpu.memory_space<vmem>>, %arg4: memref<1x96xf32, #tpu.memory_space<vmem>>, %arg5: memref<2x96x96xf32, #tpu.memory_space<vmem>>, %arg6: memref<2x1x96xf32, #tpu.memory_space<vmem>>, %arg7: memref<96x32xf32, #tpu.memory_space<vmem>>, %arg8: memref<1x32xf32, #tpu.memory_space<vmem>>, %arg9: memref<32x16xf32, #tpu.memory_space<vmem>>, %arg10: memref<1x16xf32, #tpu.memory_space<vmem>>, %arg11: memref<16x32xf32, #tpu.memory_space<vmem>>, %arg12: memref<1x32xf32, #tpu.memory_space<vmem>>, %arg13: memref<2x32x32xf32, #tpu.memory_space<vmem>>, %arg14: memref<2x1x32xf32, #tpu.memory_space<vmem>>, %arg15: memref<32x128xf32, #tpu.memory_space<vmem>>, %arg16: memref<1x128xf32, #tpu.memory_space<vmem>>, %arg17: memref<32x128xf32, #tpu.memory_space<vmem>>) attributes {dimension_semantics = [#tpu.dimension_semantics<parallel>], iteration_bounds = array<i64: 2>, scalar_prefetch = 0 : i64, scratch_operands = 0 : i64, tpu.core_type = #tpu.core_type<tc>, window_params = [{transform_indices = @transform_0, window_bounds = array<i64: 32, 48>}, {pipeline_mode = #tpu.pipeline_mode<synchronous>, transform_indices = @transform_1, window_bounds = array<i64: 3, 96>}, {pipeline_mode = #tpu.pipeline_mode<synchronous>, transform_indices = @transform_2, window_bounds = array<i64: 48, 96>}, {pipeline_mode = #tpu.pipeline_mode<synchronous>, transform_indices = @transform_3, window_bounds = array<i64: 1, 96>}, {pipeline_mode = #tpu.pipeline_mode<synchronous>, transform_indices = @transform_4, window_bounds = array<i64: 2, 96, 96>}, {pipeline_mode = #tpu.pipeline_mode<synchronous>, transform_indices = @transform_5, window_bounds = array<i64: 2, 1, 96>}, {pipeline_mode = #tpu.pipeline_mode<synchronous>, transform_indices = @transform_6, window_bounds = array<i64: 96, 32>}, {pipeline_mode = #tpu.pipeline_mode<synchronous>, transform_indices = @transform_7, window_bounds = array<i64: 1, 32>}, {pipeline_mode = #tpu.pipeline_mode<synchronous>, transform_indices = @transform_8, window_bounds = array<i64: 32, 16>}, {pipeline_mode = #tpu.pipeline_mode<synchronous>, transform_indices = @transform_9, window_bounds = array<i64: 1, 16>}, {pipeline_mode = #tpu.pipeline_mode<synchronous>, transform_indices = @transform_10, window_bounds = array<i64: 16, 32>}, {pipeline_mode = #tpu.pipeline_mode<synchronous>, transform_indices = @transform_11, window_bounds = array<i64: 1, 32>}, {pipeline_mode = #tpu.pipeline_mode<synchronous>, transform_indices = @transform_12, window_bounds = array<i64: 2, 32, 32>}, {pipeline_mode = #tpu.pipeline_mode<synchronous>, transform_indices = @transform_13, window_bounds = array<i64: 2, 1, 32>}, {pipeline_mode = #tpu.pipeline_mode<synchronous>, transform_indices = @transform_14, window_bounds = array<i64: 32, 128>}, {pipeline_mode = #tpu.pipeline_mode<synchronous>, transform_indices = @transform_15, window_bounds = array<i64: 1, 128>}, {transform_indices = @transform_16, window_bounds = array<i64: 32, 128>}]} {
    %c0 = arith.constant 0 : index
    %c0_0 = arith.constant 0 : index
    %0 = vector.load %arg1[%c0, %c0_0] : memref<32x48xf32, #tpu.memory_space<vmem>>, vector<32x48xf32>
    %c0_1 = arith.constant 0 : index
    %c0_2 = arith.constant 0 : index
    %1 = vector.load %arg3[%c0_1, %c0_2] : memref<48x96xf32, #tpu.memory_space<vmem>>, vector<48x96xf32>
    %cst = arith.constant dense<0.000000e+00> : vector<32x96xf32>
    %2 = tpu.matmul %0, %1, %cst {dimension_numbers = #tpu.dot_dimension_numbers<[1], [0], [0], [1], [0, 0, 1, 1], [], []>} : vector<32x48xf32>, vector<48x96xf32>, vector<32x96xf32> -> vector<32x96xf32>
    %c0_3 = arith.constant 0 : index
    %c0_4 = arith.constant 0 : index
    %3 = vector.load %arg4[%c0_3, %c0_4] : memref<1x96xf32, #tpu.memory_space<vmem>>, vector<1x96xf32>
    %4 = vector.broadcast %3 : vector<1x96xf32> to vector<32x96xf32>
    %5 = arith.addf %2, %4 : vector<32x96xf32>
    %c0_5 = arith.constant 0 : index
    %c0_6 = arith.constant 0 : index
    %6 = vector.load %arg2[%c0_5, %c0_6] : memref<3x96xf32, #tpu.memory_space<vmem>>, vector<1x96xf32>
    %7 = vector.broadcast %6 : vector<1x96xf32> to vector<32x96xf32>
    %8 = arith.mulf %5, %7 : vector<32x96xf32>
    %c0_7 = arith.constant 0 : index
    %c0_8 = arith.constant 0 : index
    %c0_9 = arith.constant 0 : index
    %9 = vector.load %arg5[%c0_7, %c0_8, %c0_9] : memref<2x96x96xf32, #tpu.memory_space<vmem>>, vector<1x96x96xf32>
    %10 = vector.shape_cast %9 : vector<1x96x96xf32> to vector<96x96xf32>
    %cst_10 = arith.constant dense<0.000000e+00> : vector<32x96xf32>
    %11 = tpu.matmul %8, %10, %cst_10 {dimension_numbers = #tpu.dot_dimension_numbers<[1], [0], [0], [1], [0, 0, 1, 1], [], []>} : vector<32x96xf32>, vector<96x96xf32>, vector<32x96xf32> -> vector<32x96xf32>
    %c0_11 = arith.constant 0 : index
    %c0_12 = arith.constant 0 : index
    %c0_13 = arith.constant 0 : index
    %12 = vector.load %arg6[%c0_11, %c0_12, %c0_13] : memref<2x1x96xf32, #tpu.memory_space<vmem>>, vector<1x1x96xf32>
    %13 = vector.shape_cast %12 : vector<1x1x96xf32> to vector<1x96xf32>
    %14 = vector.broadcast %13 : vector<1x96xf32> to vector<32x96xf32>
    %15 = arith.addf %11, %14 : vector<32x96xf32>
    %c1 = arith.constant 1 : index
    %c0_14 = arith.constant 0 : index
    %16 = vector.load %arg2[%c1, %c0_14] : memref<3x96xf32, #tpu.memory_space<vmem>>, vector<1x96xf32>
    %17 = vector.broadcast %16 : vector<1x96xf32> to vector<32x96xf32>
    %18 = arith.mulf %15, %17 : vector<32x96xf32>
    %c1_15 = arith.constant 1 : index
    %c0_16 = arith.constant 0 : index
    %c0_17 = arith.constant 0 : index
    %19 = vector.load %arg5[%c1_15, %c0_16, %c0_17] : memref<2x96x96xf32, #tpu.memory_space<vmem>>, vector<1x96x96xf32>
    %20 = vector.shape_cast %19 : vector<1x96x96xf32> to vector<96x96xf32>
    %cst_18 = arith.constant dense<0.000000e+00> : vector<32x96xf32>
    %21 = tpu.matmul %18, %20, %cst_18 {dimension_numbers = #tpu.dot_dimension_numbers<[1], [0], [0], [1], [0, 0, 1, 1], [], []>} : vector<32x96xf32>, vector<96x96xf32>, vector<32x96xf32> -> vector<32x96xf32>
    %c1_19 = arith.constant 1 : index
    %c0_20 = arith.constant 0 : index
    %c0_21 = arith.constant 0 : index
    %22 = vector.load %arg6[%c1_19, %c0_20, %c0_21] : memref<2x1x96xf32, #tpu.memory_space<vmem>>, vector<1x1x96xf32>
    %23 = vector.shape_cast %22 : vector<1x1x96xf32> to vector<1x96xf32>
    %24 = vector.broadcast %23 : vector<1x96xf32> to vector<32x96xf32>
    %25 = arith.addf %21, %24 : vector<32x96xf32>
    %c2 = arith.constant 2 : index
    %c0_22 = arith.constant 0 : index
    %26 = vector.load %arg2[%c2, %c0_22] : memref<3x96xf32, #tpu.memory_space<vmem>>, vector<1x96xf32>
    %27 = vector.broadcast %26 : vector<1x96xf32> to vector<32x96xf32>
    %28 = arith.mulf %25, %27 : vector<32x96xf32>
    %c0_23 = arith.constant 0 : index
    %c0_24 = arith.constant 0 : index
    %29 = vector.load %arg7[%c0_23, %c0_24] : memref<96x32xf32, #tpu.memory_space<vmem>>, vector<96x32xf32>
    %cst_25 = arith.constant dense<0.000000e+00> : vector<32x32xf32>
    %30 = tpu.matmul %28, %29, %cst_25 {dimension_numbers = #tpu.dot_dimension_numbers<[1], [0], [0], [1], [0, 0, 1, 1], [], []>} : vector<32x96xf32>, vector<96x32xf32>, vector<32x32xf32> -> vector<32x32xf32>
    %c0_26 = arith.constant 0 : index
    %c0_27 = arith.constant 0 : index
    %31 = vector.load %arg8[%c0_26, %c0_27] : memref<1x32xf32, #tpu.memory_space<vmem>>, vector<1x32xf32>
    %32 = vector.broadcast %31 : vector<1x32xf32> to vector<32x32xf32>
    %33 = arith.addf %30, %32 : vector<32x32xf32>
    %cst_28 = arith.constant 0.000000e+00 : f32
    %34 = vector.broadcast %cst_28 : f32 to vector<32x32xf32>
    %35 = arith.cmpf ogt, %33, %34 : vector<32x32xf32>
    %cst_29 = arith.constant 0.00999999977 : f32
    %36 = vector.broadcast %cst_29 : f32 to vector<32x32xf32>
    %37 = arith.mulf %36, %33 : vector<32x32xf32>
    %38 = arith.select %35, %33, %37 : vector<32x32xi1>, vector<32x32xf32>
    %c0_30 = arith.constant 0 : index
    %c0_31 = arith.constant 0 : index
    %39 = vector.load %arg9[%c0_30, %c0_31] : memref<32x16xf32, #tpu.memory_space<vmem>>, vector<32x16xf32>
    %cst_32 = arith.constant dense<0.000000e+00> : vector<32x16xf32>
    %40 = tpu.matmul %38, %39, %cst_32 {dimension_numbers = #tpu.dot_dimension_numbers<[1], [0], [0], [1], [0, 0, 1, 1], [], []>} : vector<32x32xf32>, vector<32x16xf32>, vector<32x16xf32> -> vector<32x16xf32>
    %c0_33 = arith.constant 0 : index
    %c0_34 = arith.constant 0 : index
    %41 = vector.load %arg10[%c0_33, %c0_34] : memref<1x16xf32, #tpu.memory_space<vmem>>, vector<1x16xf32>
    %42 = vector.broadcast %41 : vector<1x16xf32> to vector<32x16xf32>
    %43 = arith.addf %40, %42 : vector<32x16xf32>
    %cst_35 = arith.constant 0.000000e+00 : f32
    %44 = vector.broadcast %cst_35 : f32 to vector<32x16xf32>
    %45 = arith.cmpf ogt, %43, %44 : vector<32x16xf32>
    %cst_36 = arith.constant 0.00999999977 : f32
    %46 = vector.broadcast %cst_36 : f32 to vector<32x16xf32>
    %47 = arith.mulf %46, %43 : vector<32x16xf32>
    %48 = arith.select %45, %43, %47 : vector<32x16xi1>, vector<32x16xf32>
    %c0_37 = arith.constant 0 : index
    %c0_38 = arith.constant 0 : index
    %49 = vector.load %arg11[%c0_37, %c0_38] : memref<16x32xf32, #tpu.memory_space<vmem>>, vector<16x32xf32>
    %cst_39 = arith.constant dense<0.000000e+00> : vector<32x32xf32>
    %50 = tpu.matmul %48, %49, %cst_39 {dimension_numbers = #tpu.dot_dimension_numbers<[1], [0], [0], [1], [0, 0, 1, 1], [], []>} : vector<32x16xf32>, vector<16x32xf32>, vector<32x32xf32> -> vector<32x32xf32>
    %c0_40 = arith.constant 0 : index
    %c0_41 = arith.constant 0 : index
    %51 = vector.load %arg12[%c0_40, %c0_41] : memref<1x32xf32, #tpu.memory_space<vmem>>, vector<1x32xf32>
    %52 = vector.broadcast %51 : vector<1x32xf32> to vector<32x32xf32>
    %53 = arith.addf %50, %52 : vector<32x32xf32>
    %cst_42 = arith.constant 0.000000e+00 : f32
    %54 = vector.broadcast %cst_42 : f32 to vector<32x32xf32>
    %55 = arith.cmpf ogt, %53, %54 : vector<32x32xf32>
    %cst_43 = arith.constant 0.00999999977 : f32
    %56 = vector.broadcast %cst_43 : f32 to vector<32x32xf32>
    %57 = arith.mulf %56, %53 : vector<32x32xf32>
    %58 = arith.select %55, %53, %57 : vector<32x32xi1>, vector<32x32xf32>
    %c0_44 = arith.constant 0 : index
    %c0_45 = arith.constant 0 : index
    %c0_46 = arith.constant 0 : index
    %59 = vector.load %arg13[%c0_44, %c0_45, %c0_46] : memref<2x32x32xf32, #tpu.memory_space<vmem>>, vector<1x32x32xf32>
    %60 = vector.shape_cast %59 : vector<1x32x32xf32> to vector<32x32xf32>
    %cst_47 = arith.constant dense<0.000000e+00> : vector<32x32xf32>
    %61 = tpu.matmul %58, %60, %cst_47 {dimension_numbers = #tpu.dot_dimension_numbers<[1], [0], [0], [1], [0, 0, 1, 1], [], []>} : vector<32x32xf32>, vector<32x32xf32>, vector<32x32xf32> -> vector<32x32xf32>
    %c0_48 = arith.constant 0 : index
    %c0_49 = arith.constant 0 : index
    %c0_50 = arith.constant 0 : index
    %62 = vector.load %arg14[%c0_48, %c0_49, %c0_50] : memref<2x1x32xf32, #tpu.memory_space<vmem>>, vector<1x1x32xf32>
    %63 = vector.shape_cast %62 : vector<1x1x32xf32> to vector<1x32xf32>
    %64 = vector.broadcast %63 : vector<1x32xf32> to vector<32x32xf32>
    %65 = arith.addf %61, %64 : vector<32x32xf32>
    %cst_51 = arith.constant 0.000000e+00 : f32
    %66 = vector.broadcast %cst_51 : f32 to vector<32x32xf32>
    %67 = arith.cmpf ogt, %65, %66 : vector<32x32xf32>
    %cst_52 = arith.constant 0.00999999977 : f32
    %68 = vector.broadcast %cst_52 : f32 to vector<32x32xf32>
    %69 = arith.mulf %68, %65 : vector<32x32xf32>
    %70 = arith.select %67, %65, %69 : vector<32x32xi1>, vector<32x32xf32>
    %c1_53 = arith.constant 1 : index
    %c0_54 = arith.constant 0 : index
    %c0_55 = arith.constant 0 : index
    %71 = vector.load %arg13[%c1_53, %c0_54, %c0_55] : memref<2x32x32xf32, #tpu.memory_space<vmem>>, vector<1x32x32xf32>
    %72 = vector.shape_cast %71 : vector<1x32x32xf32> to vector<32x32xf32>
    %cst_56 = arith.constant dense<0.000000e+00> : vector<32x32xf32>
    %73 = tpu.matmul %70, %72, %cst_56 {dimension_numbers = #tpu.dot_dimension_numbers<[1], [0], [0], [1], [0, 0, 1, 1], [], []>} : vector<32x32xf32>, vector<32x32xf32>, vector<32x32xf32> -> vector<32x32xf32>
    %c1_57 = arith.constant 1 : index
    %c0_58 = arith.constant 0 : index
    %c0_59 = arith.constant 0 : index
    %74 = vector.load %arg14[%c1_57, %c0_58, %c0_59] : memref<2x1x32xf32, #tpu.memory_space<vmem>>, vector<1x1x32xf32>
    %75 = vector.shape_cast %74 : vector<1x1x32xf32> to vector<1x32xf32>
    %76 = vector.broadcast %75 : vector<1x32xf32> to vector<32x32xf32>
    %77 = arith.addf %73, %76 : vector<32x32xf32>
    %cst_60 = arith.constant 0.000000e+00 : f32
    %78 = vector.broadcast %cst_60 : f32 to vector<32x32xf32>
    %79 = arith.cmpf ogt, %77, %78 : vector<32x32xf32>
    %cst_61 = arith.constant 0.00999999977 : f32
    %80 = vector.broadcast %cst_61 : f32 to vector<32x32xf32>
    %81 = arith.mulf %80, %77 : vector<32x32xf32>
    %82 = arith.select %79, %77, %81 : vector<32x32xi1>, vector<32x32xf32>
    %c0_62 = arith.constant 0 : index
    %c0_63 = arith.constant 0 : index
    %83 = vector.load %arg15[%c0_62, %c0_63] : memref<32x128xf32, #tpu.memory_space<vmem>>, vector<32x128xf32>
    %cst_64 = arith.constant dense<0.000000e+00> : vector<32x128xf32>
    %84 = tpu.matmul %82, %83, %cst_64 {dimension_numbers = #tpu.dot_dimension_numbers<[1], [0], [0], [1], [0, 0, 1, 1], [], []>} : vector<32x32xf32>, vector<32x128xf32>, vector<32x128xf32> -> vector<32x128xf32>
    %c0_65 = arith.constant 0 : index
    %c0_66 = arith.constant 0 : index
    %85 = vector.load %arg16[%c0_65, %c0_66] : memref<1x128xf32, #tpu.memory_space<vmem>>, vector<1x128xf32>
    %86 = vector.broadcast %85 : vector<1x128xf32> to vector<32x128xf32>
    %87 = arith.addf %84, %86 : vector<32x128xf32>
    %c0_67 = arith.constant 0 : index
    %c0_68 = arith.constant 0 : index
    %88 = vector.load %arg17[%c0_67, %c0_68] : memref<32x128xf32, #tpu.memory_space<vmem>>, vector<32x128xf32>
    tpu.vector_store %arg17[%c0_67, %c0_68], %87 {strides = array<i32>} : memref<32x128xf32, #tpu.memory_space<vmem>>, vector<32x128xf32>,
    return
  }
  func.func @transform_0(%arg0: i32) -> (i32, i32) {
    %c0_i32 = arith.constant 0 : i32
    %c0_i32_0 = arith.constant 0 : i32
    return %arg0, %c0_i32 : i32, i32
  }
  func.func @transform_1(%arg0: i32) -> (i32, i32) {
    %c0_i32 = arith.constant 0 : i32
    %c0_i32_0 = arith.constant 0 : i32
    %c0_i32_1 = arith.constant 0 : i32
    return %c0_i32, %c0_i32_0 : i32, i32
  }
  func.func @transform_2(%arg0: i32) -> (i32, i32) {
    %c0_i32 = arith.constant 0 : i32
    %c0_i32_0 = arith.constant 0 : i32
    %c0_i32_1 = arith.constant 0 : i32
    return %c0_i32, %c0_i32_0 : i32, i32
  }
  func.func @transform_3(%arg0: i32) -> (i32, i32) {
    %c0_i32 = arith.constant 0 : i32
    %c0_i32_0 = arith.constant 0 : i32
    %c0_i32_1 = arith.constant 0 : i32
    return %c0_i32, %c0_i32_0 : i32, i32
  }
  func.func @transform_4(%arg0: i32) -> (i32, i32, i32) {
    %c0_i32 = arith.constant 0 : i32
    %c0_i32_0 = arith.constant 0 : i32
    %c0_i32_1 = arith.constant 0 : i32
    %c0_i32_2 = arith.constant 0 : i32
    return %c0_i32, %c0_i32_0, %c0_i32_1 : i32, i32, i32
  }
  func.func @transform_5(%arg0: i32) -> (i32, i32, i32) {
    %c0_i32 = arith.constant 0 : i32
    %c0_i32_0 = arith.constant 0 : i32
    %c0_i32_1 = arith.constant 0 : i32
    %c0_i32_2 = arith.constant 0 : i32
    return %c0_i32, %c0_i32_0, %c0_i32_1 : i32, i32, i32
  }
  func.func @transform_6(%arg0: i32) -> (i32, i32) {
    %c0_i32 = arith.constant 0 : i32
    %c0_i32_0 = arith.constant 0 : i32
    %c0_i32_1 = arith.constant 0 : i32
    return %c0_i32, %c0_i32_0 : i32, i32
  }
  func.func @transform_7(%arg0: i32) -> (i32, i32) {
    %c0_i32 = arith.constant 0 : i32
    %c0_i32_0 = arith.constant 0 : i32
    %c0_i32_1 = arith.constant 0 : i32
    return %c0_i32, %c0_i32_0 : i32, i32
  }
  func.func @transform_8(%arg0: i32) -> (i32, i32) {
    %c0_i32 = arith.constant 0 : i32
    %c0_i32_0 = arith.constant 0 : i32
    %c0_i32_1 = arith.constant 0 : i32
    return %c0_i32, %c0_i32_0 : i32, i32
  }
  func.func @transform_9(%arg0: i32) -> (i32, i32) {
    %c0_i32 = arith.constant 0 : i32
    %c0_i32_0 = arith.constant 0 : i32
    %c0_i32_1 = arith.constant 0 : i32
    return %c0_i32, %c0_i32_0 : i32, i32
  }
  func.func @transform_10(%arg0: i32) -> (i32, i32) {
    %c0_i32 = arith.constant 0 : i32
    %c0_i32_0 = arith.constant 0 : i32
    %c0_i32_1 = arith.constant 0 : i32
    return %c0_i32, %c0_i32_0 : i32, i32
  }
  func.func @transform_11(%arg0: i32) -> (i32, i32) {
    %c0_i32 = arith.constant 0 : i32
    %c0_i32_0 = arith.constant 0 : i32
    %c0_i32_1 = arith.constant 0 : i32
    return %c0_i32, %c0_i32_0 : i32, i32
  }
  func.func @transform_12(%arg0: i32) -> (i32, i32, i32) {
    %c0_i32 = arith.constant 0 : i32
    %c0_i32_0 = arith.constant 0 : i32
    %c0_i32_1 = arith.constant 0 : i32
    %c0_i32_2 = arith.constant 0 : i32
    return %c0_i32, %c0_i32_0, %c0_i32_1 : i32, i32, i32
  }
  func.func @transform_13(%arg0: i32) -> (i32, i32, i32) {
    %c0_i32 = arith.constant 0 : i32
    %c0_i32_0 = arith.constant 0 : i32
    %c0_i32_1 = arith.constant 0 : i32
    %c0_i32_2 = arith.constant 0 : i32
    return %c0_i32, %c0_i32_0, %c0_i32_1 : i32, i32, i32
  }
  func.func @transform_14(%arg0: i32) -> (i32, i32) {
    %c0_i32 = arith.constant 0 : i32
    %c0_i32_0 = arith.constant 0 : i32
    %c0_i32_1 = arith.constant 0 : i32
    return %c0_i32, %c0_i32_0 : i32, i32
  }
  func.func @transform_15(%arg0: i32) -> (i32, i32) {
    %c0_i32 = arith.constant 0 : i32
    %c0_i32_0 = arith.constant 0 : i32
    %c0_i32_1 = arith.constant 0 : i32
    return %c0_i32, %c0_i32_0 : i32, i32
  }
  func.func @transform_16(%arg0: i32) -> (i32, i32) {
    %c0_i32 = arith.constant 0 : i32
    %c0_i32_0 = arith.constant 0 : i32
    return %arg0, %c0_i32 : i32, i32
  }
}

</mosaic_0001>

<bundles_post_ra>
// kernel: tpu_custom_call.1
= control target key start
LH: loop header
LB: loop body
LE: loop exit
PB: predicated region body
PF: predicated region fallthrough
CT: control target
= control target key end

     0   :  { %s3158_s0 = inlined_call_operand.vmem [shape: f32[64,48], index: 0, kind: input, shape index: {}]   ;;  %s3159_s1 = inlined_call_operand.hbm [shape: f32[3,96], index: 1, kind: input, shape index: {}]   ;;  %s3160_s2 = inlined_call_operand.hbm [shape: f32[48,96], index: 2, kind: input, shape index: {}]   ;;  %s3161_s3 = inlined_call_operand.hbm [shape: f32[1,96], index: 3, kind: input, shape index: {}]   ;;  %s3162_s4 = inlined_call_operand.vmem [shape: f32[2,96,96], index: 4, kind: input, shape index: {}]   ;;  %s3163_s5 = inlined_call_operand.vmem [shape: f32[2,1,96], index: 5, kind: input, shape index: {}]   ;;  %s3164_s6 = inlined_call_operand.vmem [shape: f32[96,32], index: 6, kind: input, shape index: {}]   ;;  %s3165_s7 = inlined_call_operand.hbm [shape: f32[1,32], index: 7, kind: input, shape index: {}]   ;;  %s3166_s8 = inlined_call_operand.vmem [shape: f32[32,16], index: 8, kind: input, shape index: {}]   ;;  %s3167_s9 = inlined_call_operand.hbm [shape: f32[1,16], index: 9, kind: input, shape index: {}]   ;;  %s3168_s10 = inlined_call_operand.vmem [shape: f32[16,32], index: 10, kind: input, shape index: {}]   ;;  %s3169_s11 = inlined_call_operand.vmem [shape: f32[1,32], index: 11, kind: input, shape index: {}]   ;;  %s3170_s12 = inlined_call_operand.vmem [shape: f32[2,32,32], index: 12, kind: input, shape index: {}]   ;;  %s3171_s13 = inlined_call_operand.vmem [shape: f32[2,1,32], index: 13, kind: input, shape index: {}]   ;;  %s3172_s14 = inlined_call_operand.vmem [shape: f32[32,128], index: 14, kind: input, shape index: {}]   ;;  %s3173_s15 = inlined_call_operand.vmem [shape: f32[1,128], index: 15, kind: input, shape index: {}]   ;;  %s3174_s16 = inlined_call_operand.hbm [shape: f32[64,128], index: 16, kind: output, shape index: {}]  }
   0x1   :  { %3189 = sst [smem:[#allocation24_spill]] %s3158_s0 }
   0x2   :  { %3190 = sst [smem:[#allocation25_spill]] %s3171_s13 }
   0x3   :  { %3191 = sst [smem:[#allocation26_spill]] %s3173_s15 }
   0x4   :  { %3192 = sst [smem:[#allocation27_spill]] %s3174_s16 }
   0x5   :  { %21 = vsyncpa [#allocation3], 0 }
   0x6   :  { %22 = vsyncpa [#allocation6], 0 }
   0x7   :  { %23 = vsyncpa [#allocation9], 0 }
   0x8   :  { %24 = vsyncpa [#allocation4], 0 }
   0x9   :  { %26 = vsyncpa [#allocation4 + $0x1], 0  ;;  %s2697_s21 = smov 0   ;;  %s2699_s22 = smov 0  }
   0xa   :  { %s2701_s23 = smov 0   ;;  %s2703_s24 = smov 0  }
   0xb LB: > { %3193 = sst [smem:[#allocation16_spill]] %s2588_s21  ;;  %s2718_s25 = sadd.s32 4294967295, %s2600_s24   ;;  %s2600_s24 = sphi %s2703_s24, %s3224_s24   ;;  %s2596_s23 = sphi %s2701_s23, %s3227_s23   ;;  %s2592_s22 = sphi %s2699_s22, %s3226_s22   ;;  %s2588_s21 = sphi %s2697_s21, %s3225_s21  }
   0xc   : > { %3194 = sst [smem:[#allocation17_spill]] %s2592_s22  ;;  %s1813_s26 = sadd.s32 4294967294, %s2600_s24  }
   0xd   : > { %3195 = sst [smem:[#allocation18_spill]] %s2596_s23  ;;  %s2722_s27 = sadd.s32 1, %s2600_s24  }
   0xe   : > { %3196 = sst [smem:[#allocation19_spill]] %s2600_s24  ;;  %s380_s28 = sadd.s32 1, %s2596_s23 }
   0xf   : > { %3197 = sst [smem:[#allocation20_spill]] %s2722_s27  ;;  %s377_s29 = ssub.s32 %s2600_s24, %s2722_s27 }
  0x10   : > { %p390_p0 = scmp.ne.s32.totalorder %s2596_s23, %s2592_s22  ;;  %p378_p1 = scmp.eq.s32.totalorder %s377_s29, 0 }
  0x11   : > { %p391_p2 = scmp.eq.s32.totalorder %s2718_s25, 1  ;;  %p396_p3 = scmp.ne.s32.totalorder %s2592_s22, %s2588_s21 }
  0x12   : > { %p397_p4 = scmp.eq.s32.totalorder %s1813_s26, 1  ;;  %p1814_p7 = scmp.ge.s32.totalorder %s2600_s24, 1 }
  0x13   : > { %s2733_s30 = scalar_select %p378_p1, %s2596_s23, %s380_s28  }
  0x14   : > { %p2735_p5 = por %p391_p2, %p390_p0  ;;  %p2739_p6 = por %p397_p4, %p396_p3 }
  0x15   : > { %3198 = sst [smem:[#allocation21_spill]] %s2733_s30  ;;  %p404_p8 = scmp.lt.s32.totalorder %s2600_s24, 3 }
  0x16   : > { %s3199_s0 = scalar_select %p2735_p5, 1, 0 }
  0x17   : > { %s3201_s17 = scalar_select %p2739_p6, 1, 0 }
  0x18   : > { %3200 = sst [smem:[#allocation22_spill]] %s3199_s0  ;;  %p3182_p9 = scmp.eq.s32.totalorder %s2718_s25, 0 }
  0x19   : > { %3202 = sst [smem:[#allocation23_spill]] %s3201_s17  ;;  %p2746_p10 = pnand %p1814_p7, %p404_p8 }
  0x1a   : > { %s2602_s19 = smov [#allocation5]   ;;  %s2603_s28 = smov [#allocation8]  }
  0x1b   : > { %s3203_s18 = scalar_select %p2746_p10, 1, 0 }
  0x1c   : > { %s427_s20 = sshll.u32 %s2602_s19, 4  ;;  %p2314_p11 = pneg %p2746_p10  ;;  %s2752_s20 = int_to_ptr.vmem [resolvable:$true] %s427_s20 }
  0x1d   : > { %s461_s29 = sshll.u32 %s2603_s28, 4  ;;  %s2604_s30 = smov [#allocation2]   ;;  %s2760_s29 = int_to_ptr.vmem [resolvable:$true] %s461_s29 }
  0x1e   : > { %p2756_p12 = pnand %p3182_p9, %p2314_p11  ;;  %s2762_s23 = sshll.u32 %s2604_s30, 4  ;;  %s418_s23 = int_to_ptr.vmem [resolvable:$true] %s2762_s23 }
  0x1f   : > { %s2386_s19 = scalar_lea.hbm %s3160_s2, 768 }
  0x20   : > { %p2387_p13 = scmp.ne.s32.totalorder %s3160_s2, %s2386_s19  ;;  %p2772_p0 = pneg %p2756_p12 }
  0x21   : > { %p2393_p3 = scmp.lt.u32.totalorder %s2386_s19, %s3160_s2 }
  0x22   : > { %p2389_p1 = pnand %p2772_p0, %p2387_p13 }
  0x24   : > { %p2390_p2 = pneg %p2389_p1 }
  0x26   : > { %p2395_p4 = pnand %p2393_p3, %p2390_p2 }
  0x28   : > { %2398 = shalt.err (!%p2395_p4)
}
  0x29   : > { %s2399_s21 = scalar_lea.vmem %s2752_s20, 768  ;;  %p2407_p9 = scmp.lt.s32.totalorder %s2752_s20, %s2752_s20 }
  0x2a   : > { %p2400_p7 = scmp.ne.s32.totalorder %s2752_s20, %s2399_s21  ;;  %p2408_p6 = scmp.lt.s32.totalorder %s2399_s21, %s2399_s21 }
  0x2c   : > { %p2402_p8 = pnand %p2400_p7, %p2772_p0  ;;  %p2409_p13 = por %p2408_p6, %p2407_p9 }
  0x2e   : > { %p2403_p11 = pneg %p2402_p8 }
  0x30   : > { %p2410_p1 = pnand %p2409_p13, %p2403_p11 }
  0x32   : > { %2413 = shalt.err (!%p2410_p1)
}
  0x33   : > { %s2605_s24 = smov 128   ;;  %s2606_s27 = smov 8  }
  0x34   : > { %2320 = dma.hbm_to_vmem [thread:$0]  (!%p2756_p12), %s3160_s2, 768, %s2752_s20, [#allocation6], %s2605_s24, %s2605_s24, %s2606_s27  }
  0x35   : > { %s2414_s0 = scalar_lea.hbm %s3165_s7, 16 }
  0x36   : > { %p2415_p6 = scmp.ne.s32.totalorder %s3165_s7, %s2414_s0  ;;  %p2421_p3 = scmp.lt.u32.totalorder %s2414_s0, %s3165_s7 }
  0x38   : > { %p2417_p9 = pnand %p2415_p6, %p2772_p0 }
  0x3a   : > { %p2418_p2 = pneg %p2417_p9 }
  0x3c   : > { %p2423_p4 = pnand %p2421_p3, %p2418_p2 }
  0x3e   : > { %2426 = shalt.err (!%p2423_p4)
}
  0x3f   : > { %s2427_s20 = scalar_lea.vmem %s2760_s29, 16  ;;  %s2434_s15 = scalar_lea.vmem %s2760_s29, 32 }
  0x40   : > { %p2428_p7 = scmp.ne.s32.totalorder %s2760_s29, %s2427_s20  ;;  %p2435_p13 = scmp.lt.s32.totalorder %s2760_s29, %s2760_s29 }
  0x41   : > { %p2436_p1 = scmp.lt.s32.totalorder %s2434_s15, %s2427_s20 }
  0x42   : > { %p2430_p8 = pnand %p2428_p7, %p2772_p0 }
  0x43   : > { %p2437_p6 = por %p2436_p1, %p2435_p13 }
  0x44   : > { %p2431_p11 = pneg %p2430_p8 }
  0x46   : > { %p2438_p9 = pnand %p2437_p6, %p2431_p11 }
  0x48   : > { %2441 = shalt.err (!%p2438_p9)
}
  0x49   : > { %2326 = dma.hbm_to_vmem [thread:$0]  (!%p2756_p12), %s3165_s7, 16, %s2760_s29, [#allocation9]  }
  0x4a   : > { %s2442_s27 = scalar_lea.hbm %s3159_s1, 64 }
  0x4b   : > { %p2443_p2 = scmp.ne.s32.totalorder %s3159_s1, %s2442_s27  ;;  %p2449_p7 = scmp.lt.u32.totalorder %s2442_s27, %s3159_s1 }
  0x4d   : > { %p2445_p3 = pnand %p2443_p2, %p2772_p0 }
  0x4f   : > { %p2446_p4 = pneg %p2445_p3 }
  0x51   : > { %p2451_p8 = pnand %p2449_p7, %p2446_p4 }
  0x53   : > { %2454 = shalt.err (!%p2451_p8)
}
  0x54   : > { %s2455_s21 = scalar_lea.vmem %s418_s23, 64  ;;  %p2463_p6 = scmp.lt.s32.totalorder %s418_s23, %s418_s23 }
  0x55   : > { %p2456_p11 = scmp.ne.s32.totalorder %s418_s23, %s2455_s21  ;;  %p2464_p9 = scmp.lt.s32.totalorder %s2455_s21, %s2455_s21 }
  0x57   : > { %p2458_p13 = pnand %p2456_p11, %p2772_p0  ;;  %p2465_p5 = por %p2464_p9, %p2463_p6 }
  0x59   : > { %p2459_p1 = pneg %p2458_p13 }
  0x5b   : > { %p2466_p10 = pnand %p2465_p5, %p2459_p1 }
  0x5d   : > { %2469 = shalt.err (!%p2466_p10)
}
  0x5e   : > { %2317 = dma.hbm_to_vmem [thread:$0]  (!%p2756_p12), %s3159_s1, 64, %s418_s23, [#allocation3]  }
  0x5f   : > { %s2607_s15 = smov [#allocation7]   ;;  %s2608_s22 = smov [#allocation10]  }
  0x60   : > { %s441_s13 = sshll.u32 %s2607_s15, 4  ;;  %s475_s0 = sshll.u32 %s2608_s22, 4  ;;  %s442_s13 = int_to_ptr.vmem [resolvable:$true] %s441_s13  ;;  %s476_s0 = int_to_ptr.vmem [resolvable:$true] %s475_s0 }
  0x61   : > { %s2470_s17 = scalar_lea.hbm %s3161_s3, 16 }
  0x62   : > { %p2471_p5 = scmp.ne.s32.totalorder %s3161_s3, %s2470_s17  ;;  %p2477_p3 = scmp.lt.u32.totalorder %s2470_s17, %s3161_s3 }
  0x64   : > { %p2473_p10 = pnand %p2471_p5, %p2772_p0 }
  0x66   : > { %p2474_p2 = pneg %p2473_p10 }
  0x68   : > { %p2479_p4 = pnand %p2477_p3, %p2474_p2 }
  0x6a   : > { %2482 = shalt.err (!%p2479_p4)
}
  0x6b   : > { %s2483_s23 = scalar_lea.vmem %s442_s13, 16  ;;  %s2490_s29 = scalar_lea.vmem %s442_s13, 32 }
  0x6c   : > { %p2484_p7 = scmp.ne.s32.totalorder %s442_s13, %s2483_s23  ;;  %p2491_p13 = scmp.lt.s32.totalorder %s442_s13, %s442_s13 }
  0x6d   : > { %p2492_p1 = scmp.lt.s32.totalorder %s2490_s29, %s2483_s23 }
  0x6e   : > { %p2486_p8 = pnand %p2484_p7, %p2772_p0 }
  0x6f   : > { %p2493_p6 = por %p2492_p1, %p2491_p13 }
  0x70   : > { %p2487_p11 = pneg %p2486_p8 }
  0x72   : > { %p2494_p9 = pnand %p2493_p6, %p2487_p11 }
  0x74   : > { %2497 = shalt.err (!%p2494_p9)
}
  0x75   : > { %2323 = dma.hbm_to_vmem [thread:$0]  (!%p2756_p12), %s3161_s3, 16, %s442_s13, [#allocation6]  }
  0x76   : > { %s2498_s27 = scalar_lea.hbm %s3167_s9, 16 }
  0x77   : > { %p2499_p5 = scmp.ne.s32.totalorder %s3167_s9, %s2498_s27  ;;  %p2505_p3 = scmp.lt.u32.totalorder %s2498_s27, %s3167_s9 }
  0x79   : > { %p2501_p10 = pnand %p2499_p5, %p2772_p0 }
  0x7b   : > { %p2502_p2 = pneg %p2501_p10 }
  0x7d   : > { %p2507_p4 = pnand %p2505_p3, %p2502_p2 }
  0x7f   : > { %2510 = shalt.err (!%p2507_p4)
}
  0x80   : > { %s2511_s21 = scalar_lea.vmem %s476_s0, 16  ;;  %s2518_s13 = scalar_lea.vmem %s476_s0, 32 }
  0x81   : > { %p2512_p7 = scmp.ne.s32.totalorder %s476_s0, %s2511_s21  ;;  %p2519_p13 = scmp.lt.s32.totalorder %s476_s0, %s476_s0 }
  0x82   : > { %p2520_p1 = scmp.lt.s32.totalorder %s2518_s13, %s2511_s21 }
  0x83   : > { %p2514_p8 = pnand %p2512_p7, %p2772_p0 }
  0x84   : > { %p2521_p6 = por %p2520_p1, %p2519_p13 }
  0x85   : > { %p2515_p11 = pneg %p2514_p8 }
  0x87   : > { %p2522_p9 = pnand %p2521_p6, %p2515_p11 }
  0x89   : > { %2525 = shalt.err (!%p2522_p9)
}
  0x8a   : > { %2329 = dma.hbm_to_vmem [thread:$0]  (!%p2756_p12), %s3167_s9, 16, %s476_s0, [#allocation9]  }
  0x8b   : > { %p3206_p5 = scmp.ne.s32.totalorder %s3203_s18, 0 }
  0x8c   : > { %p3207_p10 = scmp.eq.s32.totalorder (!%p3206_p5), %s2718_s25, 0 }
  0x8d   : > { %515 = sbr.rel (%p3206_p5) target bundleno = 2154 (0x86a), region = 84 }
  0x94   : > { %2571 = dma.done.wait (%p3207_p10), [#allocation3], 64   ;;  %p3208_p0 = pmov %p3207_p10 }
  0x96   : > { %2573 = vsyncadd (%p3208_p0), [#allocation3], 4294967232  ;;  %p3209_p2 = pmov %p3208_p0 }
  0x97   : > { %p3210_p3 = pmov %p3208_p0 }
  0x98   : > { %2575 = dma.done.wait (%p3209_p2), [#allocation6], 784  }
  0x99   : > { %2577 = vsyncadd (%p3210_p3), [#allocation6], 4294966512  ;;  %p3211_p4 = pmov %p3208_p0 }
  0x9a   : > { %p3212_p12 = pmov %p3208_p0 }
  0x9b   : > { %2579 = dma.done.wait (%p3211_p4), [#allocation9], 32  }
  0x9c   : > { %2581 = vsyncadd (%p3212_p12), [#allocation9], 4294967264  ;;  %s1828_s16 = sshll.u32 %s2718_s25, 2  ;;  %s3213_s20 = sld [smem:[#allocation24_spill]]  ;;  %v592_v0 = vld [vmem:[#allocation5] sm:$0xff]  ;;  %v593_v1 = vld [vmem:[#allocation5 + $0x8] sm:$0xff] }
  0x9d   : > { %p582_p7 = scmp.lt.s32.totalorder %s1828_s16, 7  ;;  %v594_v2 = vld [vmem:[#allocation5 + $0x10] sm:$0xff]  ;;  %vm605_vm0 = vcmask 392192   ;;  %v2172_v3 = vpack.c.bf16 %v593_v1, %v592_v0  ;;  %v595_v4 = vld [vmem:[#allocation5 + $0x18] sm:$0xff]  ;;  %v596_v6 = vld [vmem:[#allocation5 + $0x20] sm:$0xff]  ;;  %vm731_vm1 = vcmask 785408  }
  0x9e   : > { %v2176_v5 = vpack.c.bf16 %v595_v4, %v594_v2  ;;  %v597_v7 = vld [vmem:[#allocation5 + $0x28] sm:$0xff]  ;;  %v712_v9 = vld [vmem:[%s3162_s4] sm:$0xff]  ;;  %v715_v13 = vld [vmem:[%s3162_s4 + $0x18] sm:$0xff]  ;;  %vm1104_vm4 = vcmask 261120   ;;  %vm1223_vm9 = vcmask 130048   ;;  %s3214_s29 = sld [smem:[#allocation25_spill]] }
  0x9f   : > { %s3229_s16 = smov (!%p582_p7, %s1828_s16), 7  ;;  %2173 = vmatprep.subr.bf16.mxu0 %v2172_v3  ;;  %v713_v10 = vld [vmem:[%s3162_s4 + $0x8] sm:$0xff]  ;;  %v714_v12 = vld [vmem:[%s3162_s4 + $0x10] sm:$0xff]  ;;  %v2180_v14 = vpack.c.bf16 %v597_v7, %v596_v6  ;;  %v716_v16 = vld [vmem:[%s3162_s4 + $0x20] sm:$0xff]  ;;  %s3215_s24 = sld [smem:[#allocation17_spill]] }
  0xa0   : > { %s1829_s18 = sshll.u32 %s3229_s16, 3  ;;  %2175 = vmatpush3.bf16.msra.mxu0 %v2172_v3  ;;  %v2184_v11 = vpack.c.bf16 %v713_v10, %v712_v9  ;;  %v2188_v15 = vpack.c.bf16 %v715_v13, %v714_v12  ;;  %v717_v17 = vld [vmem:[%s3162_s4 + $0x28] sm:$0xff]  ;;  %v718_v19 = vld [vmem:[%s3162_s4 + $0x30] sm:$0xff]  ;;  %v719_v20 = vld [vmem:[%s3162_s4 + $0x38] sm:$0xff]  ;;  %s3216_s30 = sld [smem:[#allocation26_spill]] }
  0xa1   : > { %2177 = vmatprep.subr.bf16.mxu0 %v2176_v5  ;;  %v2192_v18 = vpack.c.bf16 %v717_v17, %v716_v16  ;;  %v2196_v22 = vpack.c.bf16 %v719_v20, %v718_v19  ;;  %v720_v24 = vld [vmem:[%s3162_s4 + $0x40] sm:$0xff]  ;;  %v721_v25 = vld [vmem:[%s3162_s4 + $0x48] sm:$0xff]  ;;  %v722_v28 = vld [vmem:[%s3162_s4 + $0x50] sm:$0xff]  ;;  %s1901_s23 = sshll.u32 %s2718_s25, 9  ;;  %s3218_s26 = sld [smem:[#allocation27_spill]] }
  0xa2   : > { %s2890_s15 = scalar_lea.vmem %s3213_s20, %s1829_s18  ;;  %2185 = vmatprep.subr.bf16.mxu1 %v2184_v11  ;;  %v2200_v27 = vpack.c.bf16 %v721_v25, %v720_v24  ;;  %v723_v29 = vld [vmem:[%s3162_s4 + $0x58] sm:$0xff]  ;;  %v1842_v31 = vld [vmem:[%s3162_s4 + $0x60] sm:$0xff]  ;;  %v1843_v32 = vld [vmem:[%s3162_s4 + $0x68] sm:$0xff]  ;;  %s2609_s22 = smov [#allocation11]  }
  0xa3   : > { %v588_v8 = vld [vmem:[%s2890_s15] sm:$0xff]  ;;  %2187 = vmatpush3.bf16.msra.mxu1 %v2184_v11  ;;  %v589_v21 = vld [vmem:[%s2890_s15 + $0x8] sm:$0xff]  ;;  %v590_v23 = vld [vmem:[%s2890_s15 + $0x10] sm:$0xff]  ;;  %v2204_v30 = vpack.c.bf16 %v723_v29, %v722_v28  ;;  %v2208_v34 = vpack.c.bf16 %v1843_v32, %v1842_v31 }
  0xa4   : > { %2010 = vmatprep.mubr.msk.f32.mxu0 %vm605_vm0, %v588_v8  ;;  %2179 = vmatpush3.bf16.msra.mxu0 %v2176_v5  ;;  %v591_v26 = vld [vmem:[%s2890_s15 + $0x18] sm:$0xff]  ;;  %v1844_v33 = vld [vmem:[%s3162_s4 + $0x70] sm:$0xff]  ;;  %v1846_v37 = vld [vmem:[%s3162_s4 + $0x80] sm:$0xff]  ;;  %s3217_s15 = sld [smem:[#allocation22_spill]] }
  0xa5   : > { %2189 = vmatprep.subr.bf16.mxu1 %v2188_v15  ;;  %2181 = vmatprep.subr.bf16.mxu0 %v2180_v14  ;;  %v1845_v35 = vld [vmem:[%s3162_s4 + $0x78] sm:$0xff]  ;;  %v1847_v38 = vld [vmem:[%s3162_s4 + $0x88] sm:$0xff]  ;;  %v1848_v40 = vld [vmem:[%s3162_s4 + $0x90] sm:$0xff]  ;;  %s578_s27 = sand.u32 1, %s3215_s24   ;;  %s2530_s24 = sshll.u32 %s2609_s22, 4  ;;  %s2531_s24 = int_to_ptr.vmem [resolvable:$false] %s2530_s24 }
  0xa6   : > { %v2212_v36 = vpack.c.bf16 %v1845_v35, %v1844_v33  ;;  %v2216_v39 = vpack.c.bf16 %v1847_v38, %v1846_v37  ;;  %v1849_v41 = vld [vmem:[%s3162_s4 + $0x98] sm:$0xff]  ;;  %v1850_v43 = vld [vmem:[%s3162_s4 + $0xa0] sm:$0xff]  ;;  %v1851_v44 = vld [vmem:[%s3162_s4 + $0xa8] sm:$0xff]  ;;  %s1827_s17 = sshll.u32 %s578_s27, 5  ;;  %s3117_s20 = scalar_lea.sflag [#allocation4], %s578_s27 }
  0xa7   : > { %2191 = vmatpush3.bf16.msra.mxu1 %v2188_v15  ;;  %v2220_v42 = vpack.c.bf16 %v1849_v41, %v1848_v40  ;;  %v2224_v45 = vpack.c.bf16 %v1851_v44, %v1850_v43  ;;  %v1830_v46 = vld [vmem:[#allocation7] ss:$0 sm:$0xff]  ;;  %v1835_v49 = vld [vmem:[#allocation2] ss:$0 sm:$0xff]  ;;  %v1853_v61 = vld [vmem:[%s3162_s4 + $0xb8] sm:$0xff]  ;;  %s580_s21 = scalar_lea.vmem [#allocation11], %s1827_s17  ;;  %s3115_s0 = scalar_lea.hbm %s3218_s26, %s1901_s23 }
  0xa8   : > { %2183 = vmatpush3.bf16.msra.mxu0 %v2180_v14  ;;  %2193 = vmatprep.subr.bf16.mxu1 %v2192_v18  ;;  %v1852_v60 = vld [vmem:[%s3162_s4 + $0xb0] sm:$0xff]  ;;  %v965_v63 = vld [vmem:[%s3164_s6] sm:$0xff]  ;;  %v966_v0 = vld [vmem:[%s3164_s6 + $0x8] sm:$0xff]  ;;  %s1701_s13 = sshll.u32 %s580_s21, 4  ;;  %s2532_s17 = scalar_lea.vmem %s2531_s24, 1024  ;;  %s3110_s13 = int_to_ptr.vmem [resolvable:$true] %s1701_s13 }
  0xa9   : > { %2209 = vmatprep.subr.bf16.mxu0 %v2208_v34  ;;  %v2228_v62 = vpack.c.bf16 %v1853_v61, %v1852_v60  ;;  %v967_v1 = vld [vmem:[%s3164_s6 + $0x10] sm:$0xff]  ;;  %v2232_v2 = vpack.c.bf16 %v966_v0, %v965_v63  ;;  %v968_v3 = vld [vmem:[%s3164_s6 + $0x18] sm:$0xff]  ;;  %v969_v5 = vld [vmem:[%s3164_s6 + $0x20] sm:$0xff]  ;;  %s2526_s25 = scalar_lea.vmem %s3110_s13, 512  ;;  %p2533_p6 = scmp.lt.s32.totalorder %s3110_s13, %s2531_s24 }
  0xaa   : > { %v2236_v4 = vpack.c.bf16 %v968_v3, %v967_v1  ;;  %v970_v6 = vld [vmem:[%s3164_s6 + $0x28] sm:$0xff]  ;;  %v971_v8 = vld [vmem:[%s3164_s6 + $0x30] sm:$0xff]  ;;  %v972_v9 = vld [vmem:[%s3164_s6 + $0x38] sm:$0xff]  ;;  %p2527_p8 = scmp.ne.s32.totalorder %s3110_s13, %s2526_s25  ;;  %p3219_p11 = scmp.ne.s32.totalorder %s3217_s15, 0 }
  0xab   : > { %2011 = vmatmul.mubr.msk.f32.vlgmr.msra.gmra.mrb[0].mxu0 %vm605_vm0, %v589_v21  ;;  %2195 = vmatpush3.bf16.msra.mxu1 %v2192_v18  ;;  %v2240_v7 = vpack.c.bf16 %v970_v6, %v969_v5  ;;  %v2244_v10 = vpack.c.bf16 %v972_v9, %v971_v8  ;;  %v973_v11 = vld [vmem:[%s3164_s6 + $0x40] sm:$0xff]  ;;  %v974_v12 = vld [vmem:[%s3164_s6 + $0x48] sm:$0xff]  ;;  %v975_v28 = vld [vmem:[%s3164_s6 + $0x50] sm:$0xff]  ;;  %p2534_p9 = scmp.lt.s32.totalorder %s2532_s17, %s2526_s25 }
  0xac   : > { %2013 = vmatprep.mubr.msk.f32.mxu0 %vm605_vm0, %v590_v23  ;;  %2197 = vmatprep.subr.bf16.mxu1 %v2196_v22  ;;  %v2248_v13 = vpack.c.bf16 %v974_v12, %v973_v11  ;;  %v1836_v14 = vld [vmem:[%s3163_s5] ss:$0 sm:$0xff]  ;;  %v1841_v17 = vld [vmem:[#allocation2 + $0x1] ss:$0 sm:$0xff]  ;;  %v976_v29 = vld [vmem:[%s3164_s6 + $0x58] sm:$0xff]  ;;  %p2528_p13 = pnand %p2527_p8, %p3219_p11 }
  0xad   : > { %2211 = vmatpush3.bf16.msra.mxu0 %v2208_v34  ;;  %v1093_v31 = vld [vmem:[%s3166_s8] sm:$0xff]  ;;  %v1094_v32 = vld [vmem:[%s3166_s8 + $0x8] sm:$0xff]  ;;  %p2535_p5 = por %p2534_p9, %p2533_p6 }
  0xae   : > { %2213 = vmatprep.subr.bf16.mxu0 %v2212_v36  ;;  %v2256_v33 = vpack.c.bf16 %v1094_v32, %v1093_v31  ;;  %v1855_v34 = vld [vmem:[%s3163_s5 + $0x1] ss:$0 sm:$0xff]  ;;  %v1860_v37 = vld [vmem:[#allocation2 + $0x2] ss:$0 sm:$0xff]  ;;  %v1334_v8 = vld [vmem:[%s3170_s12 + $0x8] sm:$0xff]  ;;  %p2529_p1 = pneg %p2528_p13 }
  0xaf   : > { %2014 = vmatmul.mubr.msk.f32.gmra.mrb[2].mxu0 %vm605_vm0, %v591_v26  ;;  %2199 = vmatpush3.bf16.msra.mxu1 %v2196_v22  ;;  %v1882_v31 = vld [vmem:[%s3170_s12 + $0x28] sm:$0xff] }
  0xb0   : > { %2201 = vmatprep.subr.bf16.mxu1 %v2200_v27  ;;  %p2536_p10 = pnand %p2535_p5, %p2529_p1 }
  0xb1   : > { %2215 = vmatpush3.bf16.msra.mxu0 %v2212_v36 }
  0xb2   : > { %2217 = vmatprep.subr.bf16.mxu0 %v2216_v39 }
  0xb3   : > { %2203 = vmatpush3.bf16.msra.mxu1 %v2200_v27 }
  0xb4   : > { %2205 = vmatprep.subr.bf16.mxu1 %v2204_v30 }
  0xb5   : > { %2219 = vmatpush3.bf16.msra.mxu0 %v2216_v39 }
  0xb6   : > { %2221 = vmatprep.subr.bf16.mxu0 %v2220_v42 }
  0xb7   : > { %2207 = vmatpush3.bf16.msra.mxu1 %v2204_v30  ;;  %v2252_v30 = vpack.c.bf16 %v976_v29, %v975_v28  ;;  %v1336_v28 = vld [vmem:[%s3170_s12 + $0x18] sm:$0xff] }
  0xb8   : > { %2233 = vmatprep.subr.bf16.mxu1 %v2232_v2 }
  0xb9   : > { %2223 = vmatpush3.bf16.msra.mxu0 %v2220_v42 }
  0xba   : > { %2225 = vmatprep.subr.bf16.mxu0 %v2224_v45 }
  0xbd   : > { %2227 = vmatpush3.bf16.msra.mxu0 %v2224_v45 }
  0xbe   : > { %2229 = vmatprep.subr.bf16.mxu0 %v2228_v62 }
  0xc1   : > { %2231 = vmatpush3.bf16.msra.mxu0 %v2228_v62 }
  0xc2   : > { %2257 = vmatprep.subr.bf16.mxu0 %v2256_v33 }
 0x17e   : > { %v2012_v47 = vpop.f32.mrb[0].mxu0 }
 0x17f   : > { %v690_v48 = vadd.f32 %v2012_v47, %v1830_v46  ;;  %v684_v50 = vpop.f32.mrb[1].mxu0 }
 0x180   : > { %v685_v51 = vadd.f32 %v1830_v46, %v684_v50 }
 0x181   : > { %v709_v54 = vmul.f32 %v1835_v49, %v690_v48  ;;  %v1095_v48 = vld [vmem:[%s3166_s8 + $0x10] sm:$0xff] }
 0x182   : > { %v2015_v52 = vpop.f32.mrb[2].mxu0  ;;  %v708_v53 = vmul.f32 %v1835_v49, %v685_v51  ;;  %v1214_v51 = vld [vmem:[%s3168_s10] sm:$0xff] }
 0x183   : > { %v700_v55 = vadd.f32 %v2015_v52, %v1830_v46  ;;  %v694_v56 = vpop.f32.mrb[3].mxu0  ;;  %v1215_v52 = vld [vmem:[%s3168_s10 + $0x8] sm:$0xff] }
 0x184   : > { %v695_v57 = vadd.f32 %v1830_v46, %v694_v56  ;;  %2040 = vmatprep.mubr.msk.f32.mxu1 %vm731_vm1, %v708_v53  ;;  %v2264_v53 = vpack.c.bf16 %v1215_v52, %v1214_v51  ;;  %v1884_v51 = vld [vmem:[%s3170_s12 + $0x38] sm:$0xff] }
 0x185   : > { %2041 = vmatmul.mubr.msk.f32.vlgmr.msra.gmra.mrb[0].mxu1 %vm731_vm1, %v709_v54  ;;  %v711_v59 = vmul.f32 %v1835_v49, %v700_v55  ;;  %v1861_v54 = vld [vmem:[#allocation8] ss:$0 sm:$0xff] }
 0x186   : > { %v710_v58 = vmul.f32 %v1835_v49, %v695_v57  ;;  %2235 = vmatpush3.bf16.msra.mxu1 %v2232_v2  ;;  %v1096_v49 = vld [vmem:[%s3166_s8 + $0x18] sm:$0xff] }
 0x187   : > { %2237 = vmatprep.subr.bf16.mxu1 %v2236_v4  ;;  %v2260_v50 = vpack.c.bf16 %v1096_v49, %v1095_v48 }
 0x188   : > { %2043 = vmatprep.mubr.msk.f32.mxu1 %vm731_vm1, %v710_v58 }
 0x189   : > { %2044 = vmatmul.mubr.msk.f32.gmra.mrb[2].mxu1 %vm731_vm1, %v711_v59 }
 0x18a   : > { %2239 = vmatpush3.bf16.msra.mxu1 %v2236_v4 }
 0x18b   : > { %2241 = vmatprep.subr.bf16.mxu1 %v2240_v7 }
 0x18e   : > { %2243 = vmatpush3.bf16.msra.mxu1 %v2240_v7  ;;  %v1333_v7 = vld [vmem:[%s3170_s12] sm:$0xff] }
 0x18f   : > { %2245 = vmatprep.subr.bf16.mxu1 %v2244_v10  ;;  %v2268_v9 = vpack.c.bf16 %v1334_v8, %v1333_v7 }
 0x192   : > { %2247 = vmatpush3.bf16.msra.mxu1 %v2244_v10  ;;  %v1866_v10 = vld [vmem:[#allocation10] ss:$0 sm:$0xff] }
 0x193   : > { %2249 = vmatprep.subr.bf16.mxu1 %v2248_v13 }
 0x196   : > { %2251 = vmatpush3.bf16.msra.mxu1 %v2248_v13 }
 0x197   : > { %2253 = vmatprep.subr.bf16.mxu1 %v2252_v30 }
 0x19a   : > { %2255 = vmatpush3.bf16.msra.mxu1 %v2252_v30  ;;  %v1881_v30 = vld [vmem:[%s3170_s12 + $0x20] sm:$0xff] }
 0x19b   : > { %2269 = vmatprep.subr.bf16.mxu1 %v2268_v9  ;;  %v2276_v32 = vpack.c.bf16 %v1882_v31, %v1881_v30 }
 0x258   : > { %v2042_v15 = vpop.f32.mrb[0].mxu1 }
 0x259   : > { %v816_v16 = vadd.f32 %v2042_v15, %v1836_v14  ;;  %v810_v18 = vpop.f32.mrb[1].mxu1 }
 0x25a   : > { %v811_v19 = vadd.f32 %v1836_v14, %v810_v18 }
 0x25b   : > { %v835_v22 = vmul.f32 %v1841_v17, %v816_v16 }
 0x25c   : > { %v834_v20 = vmul.f32 %v1841_v17, %v811_v19  ;;  %v2045_v21 = vpop.f32.mrb[2].mxu1 }
 0x25d   : > { %v826_v23 = vadd.f32 %v2045_v21, %v1836_v14  ;;  %v820_v24 = vpop.f32.mrb[3].mxu1 }
 0x25e   : > { %v821_v25 = vadd.f32 %v1836_v14, %v820_v24  ;;  %2070 = vmatprep.mubr.msk.f32.mxu0 %vm731_vm1, %v834_v20 }
 0x25f   : > { %2071 = vmatmul.mubr.msk.f32.vlgmr.msra.gmra.mrb[4].mxu0 %vm731_vm1, %v835_v22  ;;  %v837_v27 = vmul.f32 %v1841_v17, %v826_v23 }
 0x260   : > { %v836_v26 = vmul.f32 %v1841_v17, %v821_v25  ;;  %2259 = vmatpush3.bf16.msra.mxu0 %v2256_v33  ;;  %v1871_v33 = vld [vmem:[%s3169_s11] ss:$0 sm:$0xff] }
 0x261   : > { %2261 = vmatprep.subr.bf16.mxu0 %v2260_v50 }
 0x262   : > { %2073 = vmatprep.mubr.msk.f32.mxu0 %vm731_vm1, %v836_v26 }
 0x263   : > { %2074 = vmatmul.mubr.msk.f32.gmra.mrb[6].mxu0 %vm731_vm1, %v837_v27  ;;  %v1335_v27 = vld [vmem:[%s3170_s12 + $0x10] sm:$0xff] }
 0x264   : > { %2263 = vmatpush3.bf16.msra.mxu0 %v2260_v50  ;;  %v2272_v29 = vpack.c.bf16 %v1336_v28, %v1335_v27  ;;  %v1883_v50 = vld [vmem:[%s3170_s12 + $0x30] sm:$0xff] }
 0x265   : > { %2265 = vmatprep.subr.bf16.mxu0 %v2264_v53  ;;  %v2280_v52 = vpack.c.bf16 %v1884_v51, %v1883_v50 }
 0x332   : > { %v2072_v35 = vpop.f32.mrb[4].mxu0 }
 0x333   : > { %v943_v36 = vadd.f32 %v2072_v35, %v1855_v34  ;;  %v937_v38 = vpop.f32.mrb[5].mxu0 }
 0x334   : > { %v938_v39 = vadd.f32 %v1855_v34, %v937_v38 }
 0x335   : > { %v962_v42 = vmul.f32 %v1860_v37, %v943_v36 }
 0x336   : > { %v961_v40 = vmul.f32 %v1860_v37, %v938_v39  ;;  %v2075_v41 = vpop.f32.mrb[6].mxu0 }
 0x337   : > { %v953_v43 = vadd.f32 %v2075_v41, %v1855_v34  ;;  %v947_v44 = vpop.f32.mrb[7].mxu0 }
 0x338   : > { %v948_v45 = vadd.f32 %v1855_v34, %v947_v44  ;;  %2100 = vmatprep.mubr.msk.f32.mxu1 %vm731_vm1, %v961_v40 }
 0x339   : > { %2101 = vmatmul.mubr.msk.f32.vlgmr.msra.gmra.mrb[4].mxu1 %vm731_vm1, %v962_v42  ;;  %v964_v47 = vmul.f32 %v1860_v37, %v953_v43 }
 0x33a   : > { %v963_v46 = vmul.f32 %v1860_v37, %v948_v45  ;;  %2271 = vmatpush3.bf16.msra.mxu1 %v2268_v9  ;;  %v1577_v9 = vld [vmem:[%s3172_s14 + $0x10] sm:$0xff] }
 0x33b   : > { %2273 = vmatprep.subr.bf16.mxu1 %v2272_v29 }
 0x33c   : > { %2103 = vmatprep.mubr.msk.f32.mxu1 %vm731_vm1, %v963_v46 }
 0x33d   : > { %2104 = vmatmul.mubr.msk.f32.gmra.mrb[6].mxu1 %vm731_vm1, %v964_v47 }
 0x33e   : > { %2275 = vmatpush3.bf16.msra.mxu1 %v2272_v29  ;;  %v1891_v29 = vld [vmem:[%s3216_s30] ss:$0 sm:$0xff] }
 0x40c   : > { %v2102_v55 = vpop.f32.mrb[4].mxu1 }
 0x40d   : > { %v1068_v56 = vadd.f32 %v2102_v55, %v1861_v54  ;;  %v1062_v57 = vpop.f32.mrb[5].mxu1 }
 0x40e   : > { %v1063_v58 = vadd.f32 %v1861_v54, %v1062_v57 }
 0x40f   : > { %v1086_v59 = vmul.f32 0.01, %v1068_v56  ;;  %vm1082_vm2 = vcmp.gt.f32.partialorder %v1068_v56, 0.0 }
 0x410   : > { %vm1081_vm3 = vcmp.gt.f32.partialorder %v1063_v58, 0.0  ;;  %v1085_v60 = vmul.f32 0.01, %v1063_v58  ;;  %v2105_v61 = vpop.f32.mrb[6].mxu1 }
 0x411   : > { %v1078_v62 = vadd.f32 %v2105_v61, %v1861_v54  ;;  %v1072_v63 = vpop.f32.mrb[7].mxu1  ;;  %v1090_v2 = vsel %vm1082_vm2, %v1068_v56, %v1086_v59  ;;  %v1876_v56 = vld [vmem:[%s3214_s29] ss:$0 sm:$0xff] }
 0x412   : > { %v1073_v0 = vadd.f32 %v1861_v54, %v1072_v63  ;;  %v1089_v1 = vsel %vm1081_vm3, %v1063_v58, %v1085_v60  ;;  %v1576_v54 = vld [vmem:[%s3172_s14 + $0x8] sm:$0xff] }
 0x413   : > { %v1088_v3 = vmul.f32 0.01, %v1078_v62  ;;  %2114 = vmatprep.mubr.msk.f32.mxu0 %vm1104_vm4, %v1089_v1  ;;  %vm1084_vm5 = vcmp.gt.f32.partialorder %v1078_v62, 0.0 }
 0x414   : > { %vm1083_vm6 = vcmp.gt.f32.partialorder %v1073_v0, 0.0  ;;  %v1087_v4 = vmul.f32 0.01, %v1073_v0  ;;  %2115 = vmatmul.mubr.msk.f32.vlgmr.msra.gmra.mrb[8].mxu0 %vm1104_vm4, %v1090_v2 }
 0x415   : > { %2267 = vmatpush3.bf16.msra.mxu0 %v2264_v53  ;;  %v1092_v6 = vsel %vm1084_vm5, %v1078_v62, %v1088_v3  ;;  %v1575_v53 = vld [vmem:[%s3172_s14] sm:$0xff] }
 0x416   : > { %v1091_v5 = vsel %vm1083_vm6, %v1073_v0, %v1087_v4  ;;  %2277 = vmatprep.subr.bf16.mxu0 %v2276_v32  ;;  %v2284_v55 = vpack.c.bf16 %v1576_v54, %v1575_v53 }
 0x417   : > { %2117 = vmatprep.mubr.msk.f32.mxu0 %vm1104_vm4, %v1091_v5 }
 0x418   : > { %2118 = vmatmul.mubr.msk.f32.gmra.mrb[10].mxu0 %vm1104_vm4, %v1092_v6  ;;  %2285 = vmatprep.subr.bf16.mxu1 %v2284_v55 }
 0x4e7   : > { %v2116_v11 = vpop.f32.mrb[8].mxu0 }
 0x4e8   : > { %v1189_v12 = vadd.f32 %v2116_v11, %v1866_v10  ;;  %v1183_v13 = vpop.f32.mrb[9].mxu0 }
 0x4e9   : > { %v1184_v14 = vadd.f32 %v1866_v10, %v1183_v13 }
 0x4ea   : > { %v1207_v15 = vmul.f32 0.01, %v1189_v12  ;;  %vm1203_vm7 = vcmp.gt.f32.partialorder %v1189_v12, 0.0 }
 0x4eb   : > { %vm1202_vm8 = vcmp.gt.f32.partialorder %v1184_v14, 0.0  ;;  %v1206_v16 = vmul.f32 0.01, %v1184_v14  ;;  %v2119_v17 = vpop.f32.mrb[10].mxu0 }
 0x4ec   : > { %v1199_v18 = vadd.f32 %v2119_v17, %v1866_v10  ;;  %v1193_v19 = vpop.f32.mrb[11].mxu0  ;;  %v1211_v22 = vsel %vm1203_vm7, %v1189_v12, %v1207_v15  ;;  %v1886_v12 = vld [vmem:[%s3214_s29 + $0x1] ss:$0 sm:$0xff] }
 0x4ed   : > { %v1194_v20 = vadd.f32 %v1866_v10, %v1193_v19  ;;  %v1210_v21 = vsel %vm1202_vm8, %v1184_v14, %v1206_v16  ;;  %v1578_v10 = vld [vmem:[%s3172_s14 + $0x18] sm:$0xff] }
 0x4ee   : > { %v1209_v23 = vmul.f32 0.01, %v1199_v18  ;;  %2124 = vmatprep.mubr.msk.f32.mxu0 %vm1223_vm9, %v1210_v21  ;;  %vm1205_vm10 = vcmp.gt.f32.partialorder %v1199_v18, 0.0  ;;  %v2288_v11 = vpack.c.bf16 %v1578_v10, %v1577_v9 }
 0x4ef   : > { %vm1204_vm11 = vcmp.gt.f32.partialorder %v1194_v20, 0.0  ;;  %v1208_v24 = vmul.f32 0.01, %v1194_v20  ;;  %2125 = vmatmul.mubr.msk.f32.vlgmr.msra.gmra.mrb[12].mxu0 %vm1223_vm9, %v1211_v22 }
 0x4f0   : > { %v1213_v26 = vsel %vm1205_vm10, %v1199_v18, %v1209_v23  ;;  %2279 = vmatpush3.bf16.msra.mxu0 %v2276_v32 }
 0x4f1   : > { %v1212_v25 = vsel %vm1204_vm11, %v1194_v20, %v1208_v24  ;;  %2281 = vmatprep.subr.bf16.mxu0 %v2280_v52 }
 0x4f2   : > { %2127 = vmatprep.mubr.msk.f32.mxu0 %vm1223_vm9, %v1212_v25 }
 0x4f3   : > { %2128 = vmatmul.mubr.msk.f32.gmra.mrb[14].mxu0 %vm1223_vm9, %v1213_v26 }
 0x4f4   : > { %2283 = vmatpush3.bf16.msra.mxu0 %v2280_v52 }
 0x5c2   : > { %v2126_v34 = vpop.f32.mrb[12].mxu0 }
 0x5c3   : > { %v1308_v35 = vadd.f32 %v2126_v34, %v1871_v33  ;;  %v1302_v36 = vpop.f32.mrb[13].mxu0 }
 0x5c4   : > { %v1303_v37 = vadd.f32 %v1871_v33, %v1302_v36 }
 0x5c5   : > { %v1326_v38 = vmul.f32 0.01, %v1308_v35  ;;  %vm1322_vm12 = vcmp.gt.f32.partialorder %v1308_v35, 0.0 }
 0x5c6   : > { %vm1321_vm13 = vcmp.gt.f32.partialorder %v1303_v37, 0.0  ;;  %v1325_v39 = vmul.f32 0.01, %v1303_v37  ;;  %v2129_v40 = vpop.f32.mrb[14].mxu0 }
 0x5c7   : > { %v1318_v41 = vadd.f32 %v2129_v40, %v1871_v33  ;;  %v1312_v42 = vpop.f32.mrb[15].mxu0  ;;  %v1330_v45 = vsel %vm1322_vm12, %v1308_v35, %v1326_v38 }
 0x5c8   : > { %v1313_v43 = vadd.f32 %v1871_v33, %v1312_v42  ;;  %v1329_v44 = vsel %vm1321_vm13, %v1303_v37, %v1325_v39 }
 0x5c9   : > { %v1328_v46 = vmul.f32 0.01, %v1318_v41  ;;  %2138 = vmatprep.mubr.msk.f32.mxu1 %vm1104_vm4, %v1329_v44  ;;  %vm1324_vm14 = vcmp.gt.f32.partialorder %v1318_v41, 0.0 }
 0x5ca   : > { %vm1323_vm15 = vcmp.gt.f32.partialorder %v1313_v43, 0.0  ;;  %v1327_v47 = vmul.f32 0.01, %v1313_v43  ;;  %2139 = vmatmul.mubr.msk.f32.vlgmr.msra.gmra.mrb[8].mxu1 %vm1104_vm4, %v1330_v45 }
 0x5cb   : > { %v1332_v49 = vsel %vm1324_vm14, %v1318_v41, %v1328_v46  ;;  %2287 = vmatpush3.bf16.msra.mxu1 %v2284_v55 }
 0x5cc   : > { %v1331_v48 = vsel %vm1323_vm15, %v1313_v43, %v1327_v47  ;;  %2289 = vmatprep.subr.bf16.mxu1 %v2288_v11 }
 0x5cd   : > { %2141 = vmatprep.mubr.msk.f32.mxu1 %vm1104_vm4, %v1331_v48 }
 0x5ce   : > { %2142 = vmatmul.mubr.msk.f32.gmra.mrb[10].mxu1 %vm1104_vm4, %v1332_v49 }
 0x5cf   : > { %2291 = vmatpush3.bf16.msra.mxu1 %v2288_v11 }
 0x69d   : > { %v2140_v57 = vpop.f32.mrb[8].mxu1 }
 0x69e   : > { %v1428_v58 = vadd.f32 %v2140_v57, %v1876_v56  ;;  %v1422_v59 = vpop.f32.mrb[9].mxu1 }
 0x69f   : > { %v1423_v60 = vadd.f32 %v1876_v56, %v1422_v59 }
 0x6a0   : > { %v1446_v61 = vmul.f32 0.01, %v1428_v58  ;;  %vm1442_vm0 = vcmp.gt.f32.partialorder %v1428_v58, 0.0 }
 0x6a1   : > { %vm1441_vm1 = vcmp.gt.f32.partialorder %v1423_v60, 0.0  ;;  %v1445_v62 = vmul.f32 0.01, %v1423_v60  ;;  %v2143_v63 = vpop.f32.mrb[10].mxu1 }
 0x6a2   : > { %v1438_v0 = vadd.f32 %v2143_v63, %v1876_v56  ;;  %v1432_v1 = vpop.f32.mrb[11].mxu1  ;;  %v1450_v4 = vsel %vm1442_vm0, %v1428_v58, %v1446_v61 }
 0x6a3   : > { %v1433_v2 = vadd.f32 %v1876_v56, %v1432_v1  ;;  %v1449_v3 = vsel %vm1441_vm1, %v1423_v60, %v1445_v62 }
 0x6a4   : > { %v1448_v5 = vmul.f32 0.01, %v1438_v0  ;;  %2152 = vmatprep.mubr.msk.f32.mxu0 %vm1104_vm4, %v1449_v3  ;;  %vm1444_vm2 = vcmp.gt.f32.partialorder %v1438_v0, 0.0 }
 0x6a5   : > { %vm1443_vm3 = vcmp.gt.f32.partialorder %v1433_v2, 0.0  ;;  %v1447_v6 = vmul.f32 0.01, %v1433_v2  ;;  %2153 = vmatmul.mubr.msk.f32.vlgmr.msra.gmra.mrb[16].mxu0 %vm1104_vm4, %v1450_v4 }
 0x6a6   : > { %v1452_v8 = vsel %vm1444_vm2, %v1438_v0, %v1448_v5 }
 0x6a7   : > { %v1451_v7 = vsel %vm1443_vm3, %v1433_v2, %v1447_v6 }
 0x6a8   : > { %2155 = vmatprep.mubr.msk.f32.mxu0 %vm1104_vm4, %v1451_v7 }
 0x6a9   : > { %2156 = vmatmul.mubr.msk.f32.gmra.mrb[18].mxu0 %vm1104_vm4, %v1452_v8 }
 0x778   : > { %v2154_v13 = vpop.f32.mrb[16].mxu0 }
 0x779   : > { %v1550_v14 = vadd.f32 %v2154_v13, %v1886_v12  ;;  %v1544_v15 = vpop.f32.mrb[17].mxu0 }
 0x77a   : > { %v1545_v16 = vadd.f32 %v1886_v12, %v1544_v15 }
 0x77b   : > { %v1568_v17 = vmul.f32 0.01, %v1550_v14  ;;  %vm1564_vm5 = vcmp.gt.f32.partialorder %v1550_v14, 0.0 }
 0x77c   : > { %vm1563_vm6 = vcmp.gt.f32.partialorder %v1545_v16, 0.0  ;;  %v1567_v18 = vmul.f32 0.01, %v1545_v16  ;;  %v2157_v19 = vpop.f32.mrb[18].mxu0 }
 0x77d   : > { %v1560_v20 = vadd.f32 %v2157_v19, %v1886_v12  ;;  %v1554_v21 = vpop.f32.mrb[19].mxu0  ;;  %v1572_v24 = vsel %vm1564_vm5, %v1550_v14, %v1568_v17 }
 0x77e   : > { %v1555_v22 = vadd.f32 %v1886_v12, %v1554_v21  ;;  %v1571_v23 = vsel %vm1563_vm6, %v1545_v16, %v1567_v18 }
 0x77f   : > { %v1570_v25 = vmul.f32 0.01, %v1560_v20  ;;  %2166 = vmatprep.mubr.msk.f32.mxu1 %vm1104_vm4, %v1571_v23  ;;  %vm1566_vm7 = vcmp.gt.f32.partialorder %v1560_v20, 0.0 }
 0x780   : > { %vm1565_vm8 = vcmp.gt.f32.partialorder %v1555_v22, 0.0  ;;  %v1569_v26 = vmul.f32 0.01, %v1555_v22  ;;  %2167 = vmatmul.mubr.msk.f32.vlgmr.msra.gmra.mrb[12].mxu1 %vm1104_vm4, %v1572_v24 }
 0x781   : > { %v1574_v28 = vsel %vm1566_vm7, %v1560_v20, %v1570_v25 }
 0x782   : > { %v1573_v27 = vsel %vm1565_vm8, %v1555_v22, %v1569_v26 }
 0x783   : > { %2169 = vmatprep.mubr.msk.f32.mxu1 %vm1104_vm4, %v1573_v27 }
 0x784   : > { %2170 = vmatmul.mubr.msk.f32.gmra.mrb[14].mxu1 %vm1104_vm4, %v1574_v28 }
 0x853   : > { %v2168_v30 = vpop.f32.mrb[12].mxu1 }
 0x854   : > { %v1670_v31 = vadd.f32 %v2168_v30, %v1891_v29  ;;  %v1664_v32 = vpop.f32.mrb[13].mxu1 }
 0x855   : > { %v1665_v33 = vadd.f32 %v1891_v29, %v1664_v32 }
 0x856   : > { %1684 = vst [vmem:[%s580_s21 + $0x8] sm:$0xff] %v1670_v31 }
 0x857   : > { %1683 = vst [vmem:[%s580_s21] sm:$0xff] %v1665_v33  ;;  %v2171_v34 = vpop.f32.mrb[14].mxu1 }
 0x858   : > { %v1680_v35 = vadd.f32 %v2171_v34, %v1891_v29  ;;  %v1674_v36 = vpop.f32.mrb[15].mxu1 }
 0x859   : > { %v1675_v37 = vadd.f32 %v1891_v29, %v1674_v36 }
 0x85a   : > { %1686 = vst [vmem:[%s580_s21 + $0x18] sm:$0xff] %v1680_v35 }
 0x85b   : > { %1685 = vst [vmem:[%s580_s21 + $0x10] sm:$0xff] %v1675_v37 }
 0x85c   : > { %2539 = shalt.err (!%p2536_p10)
}
 0x85d   : > { %s2540_s27 = scalar_lea.hbm %s3115_s0, 512  ;;  %s2544_s30 = scalar_lea.hbm %s3218_s26, 1024 }
 0x85e   : > { %p2541_p0 = scmp.ne.s32.totalorder %s3115_s0, %s2540_s27  ;;  %p2545_p4 = scmp.lt.u32.totalorder %s3115_s0, %s3218_s26 }
 0x85f   : > { %p2546_p12 = scmp.lt.u32.totalorder %s2544_s30, %s2540_s27  ;;  %p2548_p8 = scmp.lt.u32.totalorder %s2540_s27, %s3115_s0 }
 0x860   : > { %p2542_p2 = pnand %p2541_p0, %p3219_p11 }
 0x861   : > { %p2547_p7 = por %p2546_p12, %p2545_p4 }
 0x862   : > { %p2543_p3 = pneg %p2542_p2 }
 0x863   : > { %p2549_p13 = por %p2548_p8, %p2547_p7 }
 0x865   : > { %p2550_p1 = pnand %p2549_p13, %p2543_p3 }
 0x867   : > { %2553 = shalt.err (!%p2550_p1)
}
 0x868   : > { %s2610_s16 = smov 128   ;;  %s2611_s18 = smov 8  }
 0x869   : > { %2312 = dma.vmem_to_hbm [thread:$0]  (%p3219_p11), %s3110_s13, 512, %s3115_s0, %s3117_s20, %s2610_s16, %s2610_s16, %s2611_s18  }
 0x86a PF: > { %s3220_s25 = sld [smem:[#allocation19_spill]]  ;;  %s3221_s22 = sld [smem:[#allocation16_spill]] }
 0x86b   : > { %s3222_s24 = sld [smem:[#allocation23_spill]] }
 0x870   : > { %p2344_p6 = scmp.ge.s32.totalorder %s3220_s25, 2  ;;  %s1716_s17 = sand.u32 1, %s3221_s22  }
 0x871   : > { %p3223_p9 = scmp.ne.s32.totalorder %s3222_s24, 0  ;;  %s1717_s27 = scalar_lea.sflag [#allocation4], %s1716_s17 }
 0x873   : > { %p2331_p5 = pnand %p2344_p6, %p3223_p9 }
 0x875   : > { %2583 = dma.done.wait (!%p2331_p5), %s1717_s27, 512  }
 0x876   : > { %2585 = vsyncadd (!%p2331_p5), %s1717_s27, 4294966784  ;;  %s3224_s24 = sld [smem:[#allocation20_spill]]  ;;  %s3225_s21 = sld [smem:[#allocation17_spill]] }
 0x877   : > { %s3226_s22 = sld [smem:[#allocation18_spill]]  ;;  %s3227_s23 = sld [smem:[#allocation21_spill]] }
 0x87c   : > { %p29_p10 = scmp.ge.s32.totalorder %s3224_s24, 4  }
 0x87e   :  { %31 = sbr.rel (!%p29_p10) target bundleno = 11 (0xb), region = 144 }
 0x885   :  { %1722 = vsyncpa [#allocation3], 1 }
 0x886   :  { %1724 = vsyncpa [#allocation3 + $0x1], 1 }
 0x887   :  { %1725 = vsyncpa [#allocation6], 1 }
 0x888   :  { %1726 = vsyncpa [#allocation9], 1 }
 0x889   :  { %1727 = vsyncpa [#allocation4], 1 }
 0x88a   :  { %1729 = vsyncpa [#allocation4 + $0x1], 1 }

</bundles_post_ra>
